<compile_context>
chip_gen: v6e
topology: v6e:2x2x1
jax: 0.10.0
libtpu: 0.0.40
codegen_flags: <defaults>
</compile_context>

<pallas_src>
import jax
import jax.numpy as jnp
from jax.experimental import pallas as pl
from jax.experimental.pallas import tpu as pltpu

OUT_PAD = 128  # lane-dense padded logit width; real out_dim sliced after the call


def _mlp_kernel(x_ref, w1_ref, b1_ref, w2_ref, b2_ref, o_ref):
    # x arrives in native f32; bf16 cast on the VPU hides under the tile DMA.
    x_bf = x_ref[...].astype(jnp.bfloat16)
    # fc1 (bf16 operands, f32 accumulation) + bias + (identity dropout) + ReLU in f32
    h = jnp.dot(x_bf, w1_ref[...], preferred_element_type=jnp.float32)
    h = jnp.maximum(h + b1_ref[...], 0.0)
    # fc2 with bf16 operands (v5e MXU has no native f32 path), f32 accumulation + bias
    out = jnp.dot(h.astype(jnp.bfloat16), w2_ref[...],
                  preferred_element_type=jnp.float32) + b2_ref[...]
    o_ref[...] = out.astype(o_ref.dtype)  # bf16, lane-dense 128-wide unmasked store


def prepare_params(w1, b1, w2, b2):
    """One-time parameter prep, hoisted out of the per-call path."""
    input_size, hidden = w1.shape
    out_dim = w2.shape[1]
    w1_bf = w1.astype(jnp.bfloat16)
    b1_2d = b1.reshape(1, hidden).astype(jnp.float32)
    w2p = jnp.zeros((hidden, OUT_PAD), jnp.bfloat16).at[:, :out_dim].set(
        w2.astype(jnp.bfloat16))
    b2p = jnp.zeros((1, OUT_PAD), jnp.float32).at[:, :out_dim].set(
        b2.reshape(1, out_dim).astype(jnp.float32))
    return (w1_bf, b1_2d, w2p, b2p, out_dim)


def _choose_tile(B, input_size, block_rows):
    """Batch tile: multiple of 16, VMEM-budget capped, >=2 grid steps when batch allows."""
    # Keep the two double-buffered f32 x tiles under ~24 MiB (safe vs every chip's
    # scoped-VMEM limit, incl. v7x's 64 MiB physical VMEM).
    vmem_x_budget = 24 * 1024 * 1024
    tm_vmem = max(16, ((vmem_x_budget // (2 * input_size * 4)) // 16) * 16)
    tm_cap = max(16, min((block_rows // 16) * 16, tm_vmem))
    if B < 32:
        return 16
    # >=2 grid steps so the "parallel" batch axis can shard across v7x's two TensorCores.
    n_steps = max(2, pl.cdiv(B, tm_cap))
    tm = 16 * (B // n_steps // 16)
    return max(16, min(tm, tm_cap))


def _mlp_call(x2d, w1_bf, b1_2d, w2p, b2p, tm, n_steps):
    input_size, hidden = w1_bf.shape
    rows = tm * n_steps
    flops = 2 * rows * (input_size * hidden + hidden * OUT_PAD)
    bytes_accessed = (rows * input_size * 4 + rows * OUT_PAD * 2
                      + w1_bf.size * 2 + w2p.size * 2
                      + b1_2d.size * 4 + b2p.size * 4)
    return pl.pallas_call(
        _mlp_kernel,
        out_shape=jax.ShapeDtypeStruct((rows, OUT_PAD), jnp.bfloat16),
        grid_spec=pltpu.PrefetchScalarGridSpec(
            num_scalar_prefetch=0,
            grid=(n_steps,),
            in_specs=[
                # x: tiled along batch (double-buffered by the auto-pipeline)
                pl.BlockSpec((tm, input_size), lambda i: (i, 0)),
                # weights / biases: constant index_map -> resident in VMEM across steps
                pl.BlockSpec((input_size, hidden), lambda i: (0, 0)),
                pl.BlockSpec((1, hidden), lambda i: (0, 0)),
                pl.BlockSpec((hidden, OUT_PAD), lambda i: (0, 0)),
                pl.BlockSpec((1, OUT_PAD), lambda i: (0, 0)),
            ],
            out_specs=pl.BlockSpec((tm, OUT_PAD), lambda i: (i, 0)),
        ),
        compiler_params=pltpu.CompilerParams(
            dimension_semantics=("parallel",),          # megacore-shardable batch axis
            vmem_limit_bytes=40 * 1024 * 1024,          # headroom; usage <= ~26 MiB by construction
        ),
        cost_estimate=pl.CostEstimate(flops=flops, transcendentals=0,
                                      bytes_accessed=bytes_accessed),
    )(x2d, w1_bf, b1_2d, w2p, b2p)


def cnn_class_forward(x, prepared_params, *, block_rows=2048):
    """x: any shape whose trailing dims flatten to input_size (PyTorch x.view(-1, input_size))."""
    w1_bf, b1_2d, w2p, b2p, out_dim = prepared_params
    input_size, _ = w1_bf.shape

    x2d = x.reshape(-1, input_size).astype(jnp.float32)
    B = x2d.shape[0]

    tm = _choose_tile(B, input_size, block_rows)
    n_full = B // tm
    b_main = n_full * tm
    rem = B - b_main

    pieces = []
    if n_full > 0:
        # Main call: the grid covers only the divisible prefix of the (unpadded,
        # uncopied) full activation array.
        out_main = _mlp_call(x2d, w1_bf, b1_2d, w2p, b2p, tm, n_full)
        pieces.append(out_main[:, :out_dim].astype(jnp.float32))
    if rem > 0:
        # Remainder (< tm rows): tiny single-tile call; only the tail rows are ever
        # sliced / padded, never the full array.
        tm_rem = 16 * pl.cdiv(rem, 16)
        x_tail = x2d[b_main:]
        if tm_rem != rem:
            x_tail = jnp.pad(x_tail, ((0, tm_rem - rem), (0, 0)))
        out_rem = _mlp_call(x_tail, w1_bf, b1_2d, w2p, b2p, tm_rem, 1)
        pieces.append(out_rem[:rem, :out_dim].astype(jnp.float32))

    return pieces[0] if len(pieces) == 1 else jnp.concatenate(pieces, axis=0)


if __name__ == "__main__":
    # Module hyperparameters (synthetic, deterministic).
    batch, channels, spatial = 2, 4, 16
    input_size = channels * spatial * spatial   # 1024
    hidden_size = 32
    p_drop = 0.5  # unused at inference (dropout = identity)
    out_dim = 4

    key = jax.random.PRNGKey(0)
    kx, kw1, kb1, kw2, kb2, kx2 = jax.random.split(key, 6)

    # Example input consistent with an NCHW conv-style tensor.
    x = jax.random.normal(kx, (batch, channels, spatial, spatial), dtype=jnp.float32)

    # Deterministic parameter init (shapes match nn.Linear(input_size, hidden) /
    # nn.Linear(hidden, 4)), stored pre-transposed for the x @ W layout.
    w1 = jax.random.normal(kw1, (input_size, hidden_size), dtype=jnp.float32) * (1.0 / jnp.sqrt(input_size))
    b1 = jax.random.normal(kb1, (hidden_size,), dtype=jnp.float32) * 0.01
    w2 = jax.random.normal(kw2, (hidden_size, out_dim), dtype=jnp.float32) * (1.0 / jnp.sqrt(hidden_size))
    b2 = jax.random.normal(kb2, (out_dim,), dtype=jnp.float32) * 0.01

    # One-time parameter prep (hoisted out of the per-call path).
    prepared = prepare_params(w1, b1, w2, b2)

    def ref_f32(xx):
        x2 = xx.reshape(-1, input_size)
        return jnp.maximum(x2 @ w1 + b1, 0.0) @ w2 + b2

    def ref_bf16(xx):
        # Mirrors the kernel's dtype choices (bf16 matmul operands, f32 accumulation,
        # bf16 output) to validate the kernel itself.
        x2 = xx.reshape(-1, input_size)
        h = jnp.dot(x2.astype(jnp.bfloat16), w1.astype(jnp.bfloat16),
                    preferred_element_type=jnp.float32) + b1
        h = jnp.maximum(h, 0.0)
        o = jnp.dot(h.astype(jnp.bfloat16), w2.astype(jnp.bfloat16),
                    preferred_element_type=jnp.float32) + b2
        return o.astype(jnp.bfloat16).astype(jnp.float32)

    # Small batch (B=2): exercises the remainder path.
    out = jax.block_until_ready(cnn_class_forward(x, prepared))
    assert out.shape == (batch, out_dim)
    assert jnp.allclose(out, ref_bf16(x), atol=2e-2, rtol=2e-2)
    assert jnp.allclose(out, ref_f32(x), atol=6e-2, rtol=6e-2)

    # Larger batch (B=40): exercises the multi-step main grid + remainder + concat path.
    x_big = jax.random.normal(kx2, (40, channels, spatial, spatial), dtype=jnp.float32)
    out_big = jax.block_until_ready(cnn_class_forward(x_big, prepared))
    assert out_big.shape == (40, out_dim)
    assert jnp.allclose(out_big, ref_bf16(x_big), atol=2e-2, rtol=2e-2)
    assert jnp.allclose(out_big, ref_f32(x_big), atol=6e-2, rtol=6e-2)

    print("KERNEL_OK")
</pallas_src>

<mosaic_0001>
module attributes {stable_mosaic.version = 11 : i64} {
  func.func @_mlp_kernel(%arg0: i32, %arg1: memref<16x1024xf32, #tpu.memory_space<vmem>>, %arg2: memref<1024x32xbf16, #tpu.memory_space<vmem>>, %arg3: memref<1x32xf32, #tpu.memory_space<vmem>>, %arg4: memref<32x128xbf16, #tpu.memory_space<vmem>>, %arg5: memref<1x128xf32, #tpu.memory_space<vmem>>, %arg6: memref<16x128xbf16, #tpu.memory_space<vmem>>) attributes {dimension_semantics = [#tpu.dimension_semantics<parallel>], iteration_bounds = array<i64: 1>, scalar_prefetch = 0 : i64, scratch_operands = 0 : i64, tpu.core_type = #tpu.core_type<tc>, window_params = [{transform_indices = @transform_0, window_bounds = array<i64: 16, 1024>}, {pipeline_mode = #tpu.pipeline_mode<synchronous>, transform_indices = @transform_1, window_bounds = array<i64: 1024, 32>}, {pipeline_mode = #tpu.pipeline_mode<synchronous>, transform_indices = @transform_2, window_bounds = array<i64: 1, 32>}, {pipeline_mode = #tpu.pipeline_mode<synchronous>, transform_indices = @transform_3, window_bounds = array<i64: 32, 128>}, {pipeline_mode = #tpu.pipeline_mode<synchronous>, transform_indices = @transform_4, window_bounds = array<i64: 1, 128>}, {transform_indices = @transform_5, window_bounds = array<i64: 16, 128>}]} {
    %c0 = arith.constant 0 : index
    %c0_0 = arith.constant 0 : index
    %0 = vector.load %arg1[%c0, %c0_0] : memref<16x1024xf32, #tpu.memory_space<vmem>>, vector<16x1024xf32>
    %1 = arith.truncf %0 : vector<16x1024xf32> to vector<16x1024xbf16>
    %c0_1 = arith.constant 0 : index
    %c0_2 = arith.constant 0 : index
    %2 = vector.load %arg2[%c0_1, %c0_2] : memref<1024x32xbf16, #tpu.memory_space<vmem>>, vector<1024x32xbf16>
    %cst = arith.constant dense<0.000000e+00> : vector<16x32xf32>
    %3 = tpu.matmul %1, %2, %cst {dimension_numbers = #tpu.dot_dimension_numbers<[1], [0], [0], [1], [0, 0, 1, 1], [], []>} : vector<16x1024xbf16>, vector<1024x32xbf16>, vector<16x32xf32> -> vector<16x32xf32>
    %c0_3 = arith.constant 0 : index
    %c0_4 = arith.constant 0 : index
    %4 = vector.load %arg3[%c0_3, %c0_4] : memref<1x32xf32, #tpu.memory_space<vmem>>, vector<1x32xf32>
    %5 = vector.broadcast %4 : vector<1x32xf32> to vector<16x32xf32>
    %6 = arith.addf %3, %5 : vector<16x32xf32>
    %cst_5 = arith.constant 0.000000e+00 : f32
    %7 = vector.broadcast %cst_5 : f32 to vector<16x32xf32>
    %8 = arith.maximumf %6, %7 : vector<16x32xf32>
    %9 = arith.truncf %8 : vector<16x32xf32> to vector<16x32xbf16>
    %c0_6 = arith.constant 0 : index
    %c0_7 = arith.constant 0 : index
    %10 = vector.load %arg4[%c0_6, %c0_7] : memref<32x128xbf16, #tpu.memory_space<vmem>>, vector<32x128xbf16>
    %cst_8 = arith.constant dense<0.000000e+00> : vector<16x128xf32>
    %11 = tpu.matmul %9, %10, %cst_8 {dimension_numbers = #tpu.dot_dimension_numbers<[1], [0], [0], [1], [0, 0, 1, 1], [], []>} : vector<16x32xbf16>, vector<32x128xbf16>, vector<16x128xf32> -> vector<16x128xf32>
    %c0_9 = arith.constant 0 : index
    %c0_10 = arith.constant 0 : index
    %12 = vector.load %arg5[%c0_9, %c0_10] : memref<1x128xf32, #tpu.memory_space<vmem>>, vector<1x128xf32>
    %13 = vector.broadcast %12 : vector<1x128xf32> to vector<16x128xf32>
    %14 = arith.addf %11, %13 : vector<16x128xf32>
    %15 = arith.truncf %14 : vector<16x128xf32> to vector<16x128xbf16>
    %c0_11 = arith.constant 0 : index
    %c0_12 = arith.constant 0 : index
    %16 = vector.load %arg6[%c0_11, %c0_12] : memref<16x128xbf16, #tpu.memory_space<vmem>>, vector<16x128xbf16>
    tpu.vector_store %arg6[%c0_11, %c0_12], %15 {strides = array<i32>} : memref<16x128xbf16, #tpu.memory_space<vmem>>, vector<16x128xbf16>,
    return
  }
  func.func @transform_0(%arg0: i32) -> (i32, i32) {
    %c0_i32 = arith.constant 0 : i32
    %c0_i32_0 = arith.constant 0 : i32
    return %arg0, %c0_i32 : i32, i32
  }
  func.func @transform_1(%arg0: i32) -> (i32, i32) {
    %c0_i32 = arith.constant 0 : i32
    %c0_i32_0 = arith.constant 0 : i32
    %c0_i32_1 = arith.constant 0 : i32
    return %c0_i32, %c0_i32_0 : i32, i32
  }
  func.func @transform_2(%arg0: i32) -> (i32, i32) {
    %c0_i32 = arith.constant 0 : i32
    %c0_i32_0 = arith.constant 0 : i32
    %c0_i32_1 = arith.constant 0 : i32
    return %c0_i32, %c0_i32_0 : i32, i32
  }
  func.func @transform_3(%arg0: i32) -> (i32, i32) {
    %c0_i32 = arith.constant 0 : i32
    %c0_i32_0 = arith.constant 0 : i32
    %c0_i32_1 = arith.constant 0 : i32
    return %c0_i32, %c0_i32_0 : i32, i32
  }
  func.func @transform_4(%arg0: i32) -> (i32, i32) {
    %c0_i32 = arith.constant 0 : i32
    %c0_i32_0 = arith.constant 0 : i32
    %c0_i32_1 = arith.constant 0 : i32
    return %c0_i32, %c0_i32_0 : i32, i32
  }
  func.func @transform_5(%arg0: i32) -> (i32, i32) {
    %c0_i32 = arith.constant 0 : i32
    %c0_i32_0 = arith.constant 0 : i32
    return %arg0, %c0_i32 : i32, i32
  }
}

</mosaic_0001>

<bundles_post_ra>
// kernel: tpu_custom_call.1
= control target key start
LH: loop header
LB: loop body
LE: loop exit
PB: predicated region body
PF: predicated region fallthrough
CT: control target
= control target key end

     0   :  { %s1386_s0 = inlined_call_operand.vmem [shape: f32[16,1024], index: 0, kind: input, shape index: {}]   ;;  %s1387_s1 = inlined_call_operand.vmem [shape: bf16[1024,32], index: 1, kind: input, shape index: {}]   ;;  %s1388_s2 = inlined_call_operand.vmem [shape: f32[1,32], index: 2, kind: input, shape index: {}]   ;;  %s1389_s3 = inlined_call_operand.vmem [shape: bf16[32,128], index: 3, kind: input, shape index: {}]   ;;  %s1390_s4 = inlined_call_operand.vmem [shape: f32[1,128], index: 4, kind: input, shape index: {}]   ;;  %s1391_s5 = inlined_call_operand.hbm [shape: bf16[16,128], index: 5, kind: output, shape index: {}]  }
   0x1   :  { %v1008_v0 = vld [vmem:[%s1387_s1 + $0x78] sm:$0xff]   ;;  %v1012_v4 = vld [vmem:[%s1387_s1 + $0x70] sm:$0xff]   ;;  %v1016_v8 = vld [vmem:[%s1387_s1 + $0x68] sm:$0xff]  }
   0x2   :  { %v1009_v1 = vld [vmem:[%s1387_s1 + $0xf8] sm:$0xff]   ;;  %904 = vmatprep.subr.bf16.mxu0 %v1008_v0  ;;  %v1013_v5 = vld [vmem:[%s1387_s1 + $0xf0] sm:$0xff]   ;;  %v1017_v9 = vld [vmem:[%s1387_s1 + $0xe8] sm:$0xff]  }
   0x3   :  { %v1010_v2 = vld [vmem:[%s1387_s1 + $0x38] sm:$0xff]   ;;  %926 = vmatprep.subr.bf16.mxu1 %v1009_v1  ;;  %v1014_v6 = vld [vmem:[%s1387_s1 + $0x30] sm:$0xff]   ;;  %v1018_v10 = vld [vmem:[%s1387_s1 + $0x28] sm:$0xff]  }
   0x4   :  { %v1011_v3 = vld [vmem:[%s1387_s1 + $0xb8] sm:$0xff]   ;;  %905 = vmatpush3.bf16.msra.mxu0 %v1010_v2  ;;  %v1015_v7 = vld [vmem:[%s1387_s1 + $0xb0] sm:$0xff]   ;;  %v1019_v11 = vld [vmem:[%s1387_s1 + $0xa8] sm:$0xff]  }
   0x5   :  { %927 = vmatpush3.bf16.msra.mxu1 %v1011_v3  ;;  %906 = vmatprep.subr.bf16.mxu0 %v1012_v4  ;;  %v1020_v12 = vld [vmem:[%s1387_s1 + $0x60] sm:$0xff]   ;;  %v1024_v16 = vld [vmem:[%s1387_s1 + $0x58] sm:$0xff]   ;;  %v1028_v20 = vld [vmem:[%s1387_s1 + $0x50] sm:$0xff]  }
   0x6   :  { %928 = vmatprep.subr.bf16.mxu1 %v1013_v5  ;;  %v1021_v13 = vld [vmem:[%s1387_s1 + $0xe0] sm:$0xff]   ;;  %v1025_v17 = vld [vmem:[%s1387_s1 + $0xd8] sm:$0xff]   ;;  %v1029_v21 = vld [vmem:[%s1387_s1 + $0xd0] sm:$0xff]  }
   0x7   :  { %v1022_v14 = vld [vmem:[%s1387_s1 + $0x20] sm:$0xff]   ;;  %v1026_v18 = vld [vmem:[%s1387_s1 + $0x18] sm:$0xff]   ;;  %v1030_v22 = vld [vmem:[%s1387_s1 + $0x10] sm:$0xff]  }
   0x8   :  { %907 = vmatpush3.bf16.msra.mxu0 %v1014_v6  ;;  %v1023_v15 = vld [vmem:[%s1387_s1 + $0xa0] sm:$0xff]   ;;  %v1027_v19 = vld [vmem:[%s1387_s1 + $0x98] sm:$0xff]   ;;  %v1031_v23 = vld [vmem:[%s1387_s1 + $0x90] sm:$0xff]  }
   0x9   :  { %929 = vmatpush3.bf16.msra.mxu1 %v1015_v7  ;;  %908 = vmatprep.subr.bf16.mxu0 %v1016_v8  ;;  %v1032_v24 = vld [vmem:[%s1387_s1 + $0x48] sm:$0xff]   ;;  %v1036_v28 = vld [vmem:[%s1387_s1 + $0x40] sm:$0xff]   ;;  %v25_v34 = vld [vmem:[%s1386_s0 + $0x18] sm:$0xff] }
   0xa   :  { %930 = vmatprep.subr.bf16.mxu1 %v1017_v9  ;;  %v1033_v25 = vld [vmem:[%s1387_s1 + $0xc8] sm:$0xff]   ;;  %v1037_v29 = vld [vmem:[%s1387_s1 + $0xc0] sm:$0xff]   ;;  %v33_v36 = vld [vmem:[%s1386_s0 + $0x58] sm:$0xff] }
   0xb   :  { %v1034_v26 = vld [vmem:[%s1387_s1 + $0x8] sm:$0xff]   ;;  %v1038_v30 = vld [vmem:[%s1387_s1] sm:$0xff]   ;;  %v41_v39 = vpack.c.bf16 %v33_v36, %v25_v34  ;;  %v24_v41 = vld [vmem:[%s1386_s0 + $0x10] sm:$0xff] }
   0xc   :  { %909 = vmatpush3.bf16.msra.mxu0 %v1018_v10  ;;  %v1035_v27 = vld [vmem:[%s1387_s1 + $0x88] sm:$0xff]   ;;  %v1039_v31 = vld [vmem:[%s1387_s1 + $0x80] sm:$0xff]   ;;  %v32_v42 = vld [vmem:[%s1386_s0 + $0x50] sm:$0xff] }
   0xd   :  { %931 = vmatpush3.bf16.msra.mxu1 %v1019_v11  ;;  %910 = vmatprep.subr.bf16.mxu0 %v1020_v12  ;;  %v23_v32 = vld [vmem:[%s1386_s0 + $0x8] sm:$0xff]  ;;  %v22_v37 = vld [vmem:[%s1386_s0] sm:$0xff]  ;;  %v40_v43 = vpack.c.bf16 %v32_v42, %v24_v41  ;;  %v1040_v44 = vld [vmem:[%s1387_s1 + $0x178] sm:$0xff]  }
   0xe   :  { %932 = vmatprep.subr.bf16.mxu1 %v1021_v13  ;;  %v31_v33 = vld [vmem:[%s1386_s0 + $0x48] sm:$0xff]  ;;  %v30_v38 = vld [vmem:[%s1386_s0 + $0x40] sm:$0xff]  ;;  %638 = vmatprep.mubr.bf16.mxu1 %v41_v39  ;;  %v1041_v45 = vld [vmem:[%s1387_s1 + $0x1f8] sm:$0xff]  }
   0xf   :  { %v39_v35 = vpack.c.bf16 %v31_v33, %v23_v32  ;;  %v38_v40 = vpack.c.bf16 %v30_v38, %v22_v37  ;;  %v1042_v46 = vld [vmem:[%s1387_s1 + $0x138] sm:$0xff]   ;;  %v1044_v48 = vld [vmem:[%s1387_s1 + $0x170] sm:$0xff]   ;;  %v1048_v52 = vld [vmem:[%s1387_s1 + $0x168] sm:$0xff]  }
  0x10   :  { %911 = vmatpush3.bf16.msra.mxu0 %v1022_v14  ;;  %v1043_v47 = vld [vmem:[%s1387_s1 + $0x1b8] sm:$0xff]   ;;  %v1045_v49 = vld [vmem:[%s1387_s1 + $0x1f0] sm:$0xff]   ;;  %v1049_v53 = vld [vmem:[%s1387_s1 + $0x1e8] sm:$0xff]  }
  0x11   :  { %933 = vmatpush3.bf16.msra.mxu1 %v1023_v15  ;;  %912 = vmatprep.subr.bf16.mxu0 %v1024_v16  ;;  %v1046_v50 = vld [vmem:[%s1387_s1 + $0x130] sm:$0xff]   ;;  %v1050_v54 = vld [vmem:[%s1387_s1 + $0x128] sm:$0xff]   ;;  %v1052_v56 = vld [vmem:[%s1387_s1 + $0x160] sm:$0xff]  }
  0x12   :  { %934 = vmatprep.subr.bf16.mxu1 %v1025_v17  ;;  %597 = vmatprep.mubr.bf16.mxu0 %v39_v35  ;;  %v1047_v51 = vld [vmem:[%s1387_s1 + $0x1b0] sm:$0xff]   ;;  %v1051_v55 = vld [vmem:[%s1387_s1 + $0x1a8] sm:$0xff]   ;;  %v1053_v57 = vld [vmem:[%s1387_s1 + $0x1e0] sm:$0xff]  }
  0x13   :  { %v1054_v58 = vld [vmem:[%s1387_s1 + $0x120] sm:$0xff]   ;;  %v1056_v60 = vld [vmem:[%s1387_s1 + $0x158] sm:$0xff]   ;;  %v1060_v0 = vld [vmem:[%s1387_s1 + $0x150] sm:$0xff]  }
  0x14   :  { %913 = vmatpush3.bf16.msra.mxu0 %v1026_v18  ;;  %v1055_v59 = vld [vmem:[%s1387_s1 + $0x1a0] sm:$0xff]   ;;  %v1057_v61 = vld [vmem:[%s1387_s1 + $0x1d8] sm:$0xff]   ;;  %v1061_v1 = vld [vmem:[%s1387_s1 + $0x1d0] sm:$0xff]  }
  0x15   :  { %935 = vmatpush3.bf16.msra.mxu1 %v1027_v19  ;;  %914 = vmatprep.subr.bf16.mxu0 %v1028_v20  ;;  %v1058_v62 = vld [vmem:[%s1387_s1 + $0x118] sm:$0xff]   ;;  %v1062_v2 = vld [vmem:[%s1387_s1 + $0x110] sm:$0xff]   ;;  %v1064_v4 = vld [vmem:[%s1387_s1 + $0x148] sm:$0xff]  }
  0x16   :  { %936 = vmatprep.subr.bf16.mxu1 %v1029_v21  ;;  %v1059_v63 = vld [vmem:[%s1387_s1 + $0x198] sm:$0xff]   ;;  %v1063_v3 = vld [vmem:[%s1387_s1 + $0x190] sm:$0xff]   ;;  %v1065_v5 = vld [vmem:[%s1387_s1 + $0x1c8] sm:$0xff]  }
  0x17   :  { %v1066_v6 = vld [vmem:[%s1387_s1 + $0x108] sm:$0xff]   ;;  %v1068_v8 = vld [vmem:[%s1387_s1 + $0x140] sm:$0xff]   ;;  %v29_v14 = vld [vmem:[%s1386_s0 + $0x38] sm:$0xff] }
  0x18   :  { %915 = vmatpush3.bf16.msra.mxu0 %v1030_v22  ;;  %v1067_v7 = vld [vmem:[%s1387_s1 + $0x188] sm:$0xff]   ;;  %v1069_v9 = vld [vmem:[%s1387_s1 + $0x1c0] sm:$0xff]   ;;  %v37_v15 = vld [vmem:[%s1386_s0 + $0x78] sm:$0xff] }
  0x19   :  { %937 = vmatpush3.bf16.msra.mxu1 %v1031_v23  ;;  %916 = vmatprep.subr.bf16.mxu0 %v1032_v24  ;;  %v1070_v10 = vld [vmem:[%s1387_s1 + $0x100] sm:$0xff]   ;;  %v27_v12 = vld [vmem:[%s1386_s0 + $0x28] sm:$0xff]  ;;  %v45_v17 = vpack.c.bf16 %v37_v15, %v29_v14  ;;  %v28_v20 = vld [vmem:[%s1386_s0 + $0x30] sm:$0xff] }
  0x1a   :  { %938 = vmatprep.subr.bf16.mxu1 %v1033_v25  ;;  %v1071_v11 = vld [vmem:[%s1387_s1 + $0x180] sm:$0xff]   ;;  %v35_v13 = vld [vmem:[%s1386_s0 + $0x68] sm:$0xff]  ;;  %v36_v22 = vld [vmem:[%s1386_s0 + $0x70] sm:$0xff] }
  0x1b   :  { %v43_v16 = vpack.c.bf16 %v35_v13, %v27_v12  ;;  %v26_v18 = vld [vmem:[%s1386_s0 + $0x20] sm:$0xff]  ;;  %v44_v23 = vpack.c.bf16 %v36_v22, %v28_v20 }
  0x1c   :  { %917 = vmatpush3.bf16.msra.mxu0 %v1034_v26  ;;  %v34_v19 = vld [vmem:[%s1386_s0 + $0x60] sm:$0xff] }
  0x1d   :  { %939 = vmatpush3.bf16.msra.mxu1 %v1035_v27  ;;  %918 = vmatprep.subr.bf16.mxu0 %v1036_v28  ;;  %v42_v21 = vpack.c.bf16 %v34_v19, %v26_v18 }
  0x1e   :  { %940 = vmatprep.subr.bf16.mxu1 %v1037_v29 }
  0x20   :  { %919 = vmatpush3.bf16.msra.mxu0 %v1038_v30 }
  0x21   :  { %941 = vmatpush3.bf16.msra.mxu1 %v1039_v31  ;;  %948 = vmatprep.subr.bf16.mxu0 %v1040_v44 }
  0x22   :  { %970 = vmatprep.subr.bf16.mxu1 %v1041_v45 }
  0x23   :  { %598 = vmatmul.mubr.bf16.vlgmr.msra.gmra.mxu0 %v38_v40 }
  0x24   :  { %639 = vmatmul.mubr.bf16.vlgmr.msra.gmra.mxu1 %v40_v43  ;;  %949 = vmatpush3.bf16.msra.mxu0 %v1042_v46 }
  0x25   :  { %971 = vmatpush3.bf16.msra.mxu1 %v1043_v47  ;;  %950 = vmatprep.subr.bf16.mxu0 %v1044_v48 }
  0x26   :  { %972 = vmatprep.subr.bf16.mxu1 %v1045_v49  ;;  %679 = vmatprep.mubr.bf16.mxu0 %v43_v16 }
  0x27   :  { %720 = vmatprep.mubr.bf16.mxu1 %v45_v17 }
  0x28   :  { %951 = vmatpush3.bf16.msra.mxu0 %v1046_v50 }
  0x29   :  { %973 = vmatpush3.bf16.msra.mxu1 %v1047_v51  ;;  %952 = vmatprep.subr.bf16.mxu0 %v1048_v52 }
  0x2a   :  { %974 = vmatprep.subr.bf16.mxu1 %v1049_v53 }
  0x2c   :  { %953 = vmatpush3.bf16.msra.mxu0 %v1050_v54 }
  0x2d   :  { %975 = vmatpush3.bf16.msra.mxu1 %v1051_v55  ;;  %954 = vmatprep.subr.bf16.mxu0 %v1052_v56 }
  0x2e   :  { %976 = vmatprep.subr.bf16.mxu1 %v1053_v57 }
  0x30   :  { %955 = vmatpush3.bf16.msra.mxu0 %v1054_v58 }
  0x31   :  { %977 = vmatpush3.bf16.msra.mxu1 %v1055_v59  ;;  %956 = vmatprep.subr.bf16.mxu0 %v1056_v60 }
  0x32   :  { %978 = vmatprep.subr.bf16.mxu1 %v1057_v61 }
  0x34   :  { %957 = vmatpush3.bf16.msra.mxu0 %v1058_v62 }
  0x35   :  { %979 = vmatpush3.bf16.msra.mxu1 %v1059_v63  ;;  %958 = vmatprep.subr.bf16.mxu0 %v1060_v0 }
  0x36   :  { %980 = vmatprep.subr.bf16.mxu1 %v1061_v1 }
  0x38   :  { %959 = vmatpush3.bf16.msra.mxu0 %v1062_v2 }
  0x39   :  { %981 = vmatpush3.bf16.msra.mxu1 %v1063_v3  ;;  %960 = vmatprep.subr.bf16.mxu0 %v1064_v4 }
  0x3a   :  { %982 = vmatprep.subr.bf16.mxu1 %v1065_v5 }
  0x3c   :  { %961 = vmatpush3.bf16.msra.mxu0 %v1066_v6 }
  0x3d   :  { %983 = vmatpush3.bf16.msra.mxu1 %v1067_v7  ;;  %962 = vmatprep.subr.bf16.mxu0 %v1068_v8 }
  0x3e   :  { %984 = vmatprep.subr.bf16.mxu1 %v1069_v9 }
  0x40   :  { %963 = vmatpush3.bf16.msra.mxu0 %v1070_v10 }
  0x41   :  { %985 = vmatpush3.bf16.msra.mxu1 %v1071_v11 }
  0x42   :  { %10 = vsyncpa [#allocation3], 0  ;;  %v1072_v24 = vld [vmem:[%s1389_s3 + $0x8] sm:$0xff]   ;;  %v1096_v25 = vmov 0.0   ;;  %v1073_v26 = vld [vmem:[%s1389_s3] sm:$0xff]   ;;  %vm1097_vm0 = vmmov 0  }
  0x43   :  { %680 = vmatmul.mubr.bf16.vlgmr.msra.gmra.mxu0 %v42_v21  ;;  %995 = vmatprep.subr.bf16.mxu0 %v1096_v25  ;;  %v826_v34 = vld [vmem:[%s1388_s2] ss:$0 sm:$0xff]  ;;  %vm755_vm1 = vcmask 261120   ;;  %s1098_s7 = smov [#allocation2]  }
  0x44   :  { %721 = vmatmul.mubr.bf16.vlgmr.msra.gmra.mxu1 %v44_v23  ;;  %996 = vmatpush3.bf16.msra.mxu0 %v1072_v24  ;;  %v891_v0 = vld [vmem:[%s1390_s4] ss:$0 sm:$0xff]  ;;  %s815_s8 = sshll.u32 %s1098_s7, 4  ;;  %s816_s8 = int_to_ptr.vmem [resolvable:$true] %s815_s8 }
  0x45   :  { %997 = vmatprep.subr.bf16.mxu0 %v1096_v25  ;;  %999 = vmatprep.mubr.msk.bf16.mxu0 %vm1097_vm0, %v1096_v25  ;;  %s1074_s9 = scalar_lea.vmem %s816_s8, 128  ;;  %p1079_p1 = scmp.lt.s32.totalorder %s816_s8, %s816_s8 }
  0x46   :  { %p1075_p0 = scmp.ne.s32.totalorder %s816_s8, %s1074_s9  ;;  %p1080_p2 = scmp.lt.s32.totalorder %s1074_s9, %s1074_s9 }
  0x48   :  { %998 = vmatpush3.bf16.msra.mxu0 %v1073_v26  ;;  %p1081_p3 = por %p1080_p2, %p1079_p1 }
  0x4a   :  { %p1082_p4 = pnand %p1081_p3, %p1075_p0 }
  0xe3   :  { %v920_v27 = vpop.f32.mrf.mxu0 }
  0xe4   :  { %v942_v28 = vpop.f32.mrf.mxu1 }
  0xe5   :  { %v921_v29 = vpop.f32.mrf.mxu0 }
  0xe6   :  { %v943_v30 = vpop.f32.mrf.mxu1  ;;  %v922_v32 = vadd.f32 %v921_v29, %v920_v27 }
  0xe7   :  { %v923_v31 = vpop.f32.mrf.mxu0  ;;  %v944_v37 = vadd.f32 %v943_v30, %v942_v28 }
  0xe8   :  { %v945_v33 = vpop.f32.mrf.mxu1  ;;  %v600_v36 = vadd.f32 %v922_v32, %v826_v34 }
  0xe9   :  { %v924_v35 = vpop.f32.mrf.mxu0 }
  0xea   :  { %v925_v38 = vadd.f32 %v924_v35, %v923_v31  ;;  %v946_v39 = vpop.f32.mrf.mxu1  ;;  %v641_v43 = vadd.f32 %v944_v37, %v600_v36 }
  0xeb   :  { %v947_v48 = vadd.f32 %v946_v39, %v945_v33 }
  0xec   :  { %v603_v44 = vadd.f32 %v925_v38, %v826_v34 }
  0xee   :  { %v644_v52 = vadd.f32 %v947_v48, %v603_v44 }
 0x103   :  { %v964_v40 = vpop.f32.mrf.mxu0 }
 0x104   :  { %v986_v41 = vpop.f32.mrf.mxu1 }
 0x105   :  { %v965_v42 = vpop.f32.mrf.mxu0 }
 0x106   :  { %v966_v45 = vadd.f32 %v965_v42, %v964_v40  ;;  %v987_v46 = vpop.f32.mrf.mxu1 }
 0x107   :  { %v967_v47 = vpop.f32.mrf.mxu0  ;;  %v988_v53 = vadd.f32 %v987_v46, %v986_v41 }
 0x108   :  { %v682_v49 = vadd.f32 %v966_v45, %v641_v43  ;;  %v989_v50 = vpop.f32.mrf.mxu1 }
 0x109   :  { %v968_v51 = vpop.f32.mrf.mxu0 }
 0x10a   :  { %v969_v54 = vadd.f32 %v968_v51, %v967_v47  ;;  %v990_v55 = vpop.f32.mrf.mxu1  ;;  %v723_v56 = vadd.f32 %v988_v53, %v682_v49 }
 0x10b   :  { %v991_v58 = vadd.f32 %v990_v55, %v989_v50 }
 0x10c   :  { %v685_v57 = vadd.f32 %v969_v54, %v644_v52  ;;  %v729_v60 = vmax.f32 %v723_v56, 0.0 }
 0x10e   :  { %v726_v59 = vadd.f32 %v991_v58, %v685_v57 }
 0x110   :  { %v730_v61 = vmax.f32 %v726_v59, 0.0 }
 0x112   :  { %v731_v62 = vpack.c.bf16 %v730_v61, %v729_v60 }
 0x114   :  { %1000 = vmatmul.mubr.msk.bf16.vlgmr.msra.gmra.mxu0 %vm755_vm1, %v731_v62 }
 0x1d4   :  { %v793_v63 = vpop.f32.mrf.mxu0 }
 0x1d5   :  { %v794_v3 = vadd.f32 %v891_v0, %v793_v63 }
 0x1d6   :  { %v1001_v1 = vpop.f32.mrf.mxu0 }
 0x1d8   :  { %v796_v2 = vpop.f32.mrf.mxu0 }
 0x1d9   :  { %v797_v4 = vadd.f32 %v891_v0, %v796_v2 }
 0x1da   :  { %v1002_v5 = vpop.f32.mrf.mxu0 }
 0x1db   :  { %v902_v6 = vpack.c.bf16 %v797_v4, %v794_v3 }
 0x1dd   :  { %903 = vst [vmem:[#allocation2] sm:$0xff] %v902_v6  }
 0x1de   :  { %1085 = shalt.err (!%p1082_p4)
}
 0x1df   :  { %s1099_s10 = smov 64   ;;  %s1100_s11 = smov 4  }
 0x1e0   :  { %821 = dma.vmem_to_hbm [thread:$0]  %s816_s8, 128, %s1391_s5, [#allocation3], %s1099_s10, %s1099_s10, %s1100_s11  }
 0x1e1   :  { %1094 = dma.done.wait [#allocation3], 128  }
 0x1e2   :  { %1095 = vsyncadd [#allocation3], 4294967168 }
 0x1e3   :  { %825 = vsyncpa [#allocation3], 1 }

</bundles_post_ra>
